<compile_context>
chip_gen: v6e
topology: v6e:2x2x1
jax: 0.10.0
libtpu: 0.0.40
codegen_flags: <defaults>
</compile_context>

<pallas_src>
import jax
import jax.numpy as jnp
from jax.experimental import pallas as pl
from jax.experimental.pallas import tpu as pltpu


def _fused_linear_bn_relu_kernel(xp_ref, xv_ref, wp_ref, wv_ref, shift_ref, o_ref):
    # xp_ref:    (TB, Fp)  policy features tile
    # xv_ref:    (TB, Fv)  value features tile
    # wp_ref:    (Fp, Dp)  BN-scale-folded policy weights (resident across the grid)
    # wv_ref:    (Fv, Dv)  BN-scale-folded value weights
    # shift_ref: (1, Dp+Dv) fused BN shift (beta - running_mean * scale)
    # o_ref:     (TB, Dp+Dv) [policy_latent | value_latent]  lane-dense (128 wide)
    acc_p = jnp.dot(xp_ref[...], wp_ref[...], preferred_element_type=jnp.float32)
    acc_v = jnp.dot(xv_ref[...], wv_ref[...], preferred_element_type=jnp.float32)
    acc = jnp.concatenate([acc_p, acc_v], axis=-1)     # cheap XLU lane-concat
    acc = acc + shift_ref[...]
    o_ref[...] = jnp.maximum(acc, 0.0).astype(o_ref.dtype)


def _round_up(x, m):
    return -(-x // m) * m


def prepare_custom_mlp_extractor_params(w_pi, w_vf, bn_pi=None, bn_vf=None, eps=1e-5):
    """One-time parameter folding (do this at module init, NOT per forward call).

    w_pi: (Dp, F), w_vf: (Dv, F)  -- nn.Linear(bias=False) weights
    bn_*: optional (gamma, beta, running_mean, running_var); default = BN init values
    returns (wp_t (F, Dp), wv_t (F, Dv), shift (1, Dp+Dv)) as f32 device arrays.
    """
    def fold(w, bn):
        D = w.shape[0]
        if bn is None:
            gamma = jnp.ones((D,), jnp.float32)
            beta = jnp.zeros((D,), jnp.float32)
            mean = jnp.zeros((D,), jnp.float32)
            var = jnp.ones((D,), jnp.float32)
        else:
            gamma, beta, mean, var = (jnp.asarray(p, jnp.float32) for p in bn)
        scale = gamma * jax.lax.rsqrt(var + eps)
        w_t = (jnp.asarray(w, jnp.float32) * scale[:, None]).T     # (F, D)
        shift = beta - mean * scale                                # (D,)
        return w_t, shift

    wp_t, shift_p = fold(w_pi, bn_pi)
    wv_t, shift_v = fold(w_vf, bn_vf)
    shift = jnp.concatenate([shift_p, shift_v]).reshape(1, -1)
    return wp_t, wv_t, shift


def custom_mlp_extractor_forward(feat_pi, feat_vf, params, *, max_tile=1024):
    """Fused forward: (latent_pi (B, Dp), latent_vf (B, Dv))."""
    wp_t, wv_t, shift = params
    B, Fp = feat_pi.shape
    Bv, Fv = feat_vf.shape
    assert B == Bv, "policy/value feature batches must match"
    Dp = wp_t.shape[1]
    Dv = wv_t.shape[1]
    Dtot = Dp + Dv

    # ---- batch tiling: scale TB with B, keep >=2 grid steps for v7x megacore ----
    Bp = _round_up(B, 8)
    n_steps = max(2, pl.cdiv(Bp, max_tile)) if Bp >= 16 else 1
    TB = _round_up(pl.cdiv(Bp, n_steps), 8)
    Bpad = n_steps * TB

    xp, xv = feat_pi, feat_vf
    if Bpad != B:
        # Thin pad up to the tile boundary (no pad at all when B is tile-aligned).
        xp = jnp.pad(xp, ((0, Bpad - B), (0, 0)))
        xv = jnp.pad(xv, ((0, Bpad - B), (0, 0)))

    itemsize = 4
    flops = 2 * Bpad * (Fp * Dp + Fv * Dv)
    bytes_accessed = itemsize * (
        Bpad * (Fp + Fv) + Fp * Dp + Fv * Dv + Dtot + Bpad * Dtot)

    out = pl.pallas_call(
        _fused_linear_bn_relu_kernel,
        out_shape=jax.ShapeDtypeStruct((Bpad, Dtot), jnp.float32),
        grid_spec=pltpu.PrefetchScalarGridSpec(
            num_scalar_prefetch=0,
            grid=(n_steps,),
            in_specs=[
                pl.BlockSpec((TB, Fp), lambda i: (i, 0)),
                pl.BlockSpec((TB, Fv), lambda i: (i, 0)),
                pl.BlockSpec((Fp, Dp), lambda i: (0, 0)),
                pl.BlockSpec((Fv, Dv), lambda i: (0, 0)),
                pl.BlockSpec((1, Dtot), lambda i: (0, 0)),
            ],
            out_specs=pl.BlockSpec((TB, Dtot), lambda i: (i, 0)),
        ),
        compiler_params=pltpu.CompilerParams(
            dimension_semantics=("parallel",)),
        cost_estimate=pl.CostEstimate(
            flops=flops, transcendentals=0, bytes_accessed=bytes_accessed),
    )(xp, xv, wp_t, wv_t, shift)

    return out[:B, :Dp], out[:B, Dp:Dp + Dv]


def _reference_branch(x, w, eps=1e-5):
    # Linear(bias=False) -> eval-mode BatchNorm1d at init (mean=0, var=1, g=1, b=0) -> ReLU
    y = x.astype(jnp.float32) @ w.astype(jnp.float32).T
    y = y / jnp.sqrt(1.0 + eps)
    return jnp.maximum(y, 0.0)


if __name__ == "__main__":
    # Module config: CustomMlpExtractor(features_dim=32, last_layer_dim_pi=64, last_layer_dim_vf=64)
    B, F = 8, 32
    Dp = Dv = 64

    key = jax.random.PRNGKey(0)
    k0, k1, k2, k3 = jax.random.split(key, 4)
    feat_pi = jax.random.normal(k0, (B, F), dtype=jnp.float32)     # features[0]
    feat_vf = jax.random.normal(k1, (B, F), dtype=jnp.float32)     # features[1]
    bound = 1.0 / (F ** 0.5)                                       # nn.Linear default init bound
    w_pi = jax.random.uniform(k2, (Dp, F), jnp.float32, -bound, bound)
    w_vf = jax.random.uniform(k3, (Dv, F), jnp.float32, -bound, bound)

    # Fold BN into the weights ONCE (init-time), then run the fused kernel.
    params = prepare_custom_mlp_extractor_params(w_pi, w_vf)

    lat_pi, lat_vf = custom_mlp_extractor_forward(feat_pi, feat_vf, params)
    lat_pi, lat_vf = jax.block_until_ready((lat_pi, lat_vf))

    ref_pi = _reference_branch(feat_pi, w_pi)
    ref_vf = _reference_branch(feat_vf, w_vf)
    assert lat_pi.shape == (B, Dp), lat_pi.shape
    assert lat_vf.shape == (B, Dv), lat_vf.shape
    assert jnp.allclose(lat_pi, ref_pi, atol=1e-4, rtol=1e-4), float(jnp.abs(lat_pi - ref_pi).max())
    assert jnp.allclose(lat_vf, ref_vf, atol=1e-4, rtol=1e-4), float(jnp.abs(lat_vf - ref_vf).max())

    # Second small check: misaligned batch -> multi-step grid + thin-pad path.
    B2 = 20
    fp2 = jax.random.normal(jax.random.PRNGKey(1), (B2, F), dtype=jnp.float32)
    fv2 = jax.random.normal(jax.random.PRNGKey(2), (B2, F), dtype=jnp.float32)
    lp2, lv2 = jax.block_until_ready(custom_mlp_extractor_forward(fp2, fv2, params))
    assert lp2.shape == (B2, Dp) and lv2.shape == (B2, Dv)
    assert jnp.allclose(lp2, _reference_branch(fp2, w_pi), atol=1e-4, rtol=1e-4)
    assert jnp.allclose(lv2, _reference_branch(fv2, w_vf), atol=1e-4, rtol=1e-4)

    print("KERNEL_OK")
</pallas_src>

<mosaic_0001>
module attributes {stable_mosaic.version = 11 : i64} {
  func.func @_fused_linear_bn_relu_kernel(%arg0: i32, %arg1: memref<8x32xf32, #tpu.memory_space<vmem>>, %arg2: memref<8x32xf32, #tpu.memory_space<vmem>>, %arg3: memref<32x64xf32, #tpu.memory_space<vmem>>, %arg4: memref<32x64xf32, #tpu.memory_space<vmem>>, %arg5: memref<1x128xf32, #tpu.memory_space<vmem>>, %arg6: memref<8x128xf32, #tpu.memory_space<vmem>>) attributes {dimension_semantics = [#tpu.dimension_semantics<parallel>], iteration_bounds = array<i64: 1>, scalar_prefetch = 0 : i64, scratch_operands = 0 : i64, tpu.core_type = #tpu.core_type<tc>, window_params = [{transform_indices = @transform_0, window_bounds = array<i64: 8, 32>}, {transform_indices = @transform_1, window_bounds = array<i64: 8, 32>}, {pipeline_mode = #tpu.pipeline_mode<synchronous>, transform_indices = @transform_2, window_bounds = array<i64: 32, 64>}, {pipeline_mode = #tpu.pipeline_mode<synchronous>, transform_indices = @transform_3, window_bounds = array<i64: 32, 64>}, {pipeline_mode = #tpu.pipeline_mode<synchronous>, transform_indices = @transform_4, window_bounds = array<i64: 1, 128>}, {transform_indices = @transform_5, window_bounds = array<i64: 8, 128>}]} {
    %c0 = arith.constant 0 : index
    %c0_0 = arith.constant 0 : index
    %0 = vector.load %arg1[%c0, %c0_0] : memref<8x32xf32, #tpu.memory_space<vmem>>, vector<8x32xf32>
    %c0_1 = arith.constant 0 : index
    %c0_2 = arith.constant 0 : index
    %1 = vector.load %arg3[%c0_1, %c0_2] : memref<32x64xf32, #tpu.memory_space<vmem>>, vector<32x64xf32>
    %cst = arith.constant dense<0.000000e+00> : vector<8x64xf32>
    %2 = tpu.matmul %0, %1, %cst {dimension_numbers = #tpu.dot_dimension_numbers<[1], [0], [0], [1], [0, 0, 1, 1], [], []>} : vector<8x32xf32>, vector<32x64xf32>, vector<8x64xf32> -> vector<8x64xf32>
    %c0_3 = arith.constant 0 : index
    %c0_4 = arith.constant 0 : index
    %3 = vector.load %arg2[%c0_3, %c0_4] : memref<8x32xf32, #tpu.memory_space<vmem>>, vector<8x32xf32>
    %c0_5 = arith.constant 0 : index
    %c0_6 = arith.constant 0 : index
    %4 = vector.load %arg4[%c0_5, %c0_6] : memref<32x64xf32, #tpu.memory_space<vmem>>, vector<32x64xf32>
    %cst_7 = arith.constant dense<0.000000e+00> : vector<8x64xf32>
    %5 = tpu.matmul %3, %4, %cst_7 {dimension_numbers = #tpu.dot_dimension_numbers<[1], [0], [0], [1], [0, 0, 1, 1], [], []>} : vector<8x32xf32>, vector<32x64xf32>, vector<8x64xf32> -> vector<8x64xf32>
    %6 = tpu.concatenate %2, %5 in 1 : vector<8x64xf32>, vector<8x64xf32> -> vector<8x128xf32>
    %c0_8 = arith.constant 0 : index
    %c0_9 = arith.constant 0 : index
    %7 = vector.load %arg5[%c0_8, %c0_9] : memref<1x128xf32, #tpu.memory_space<vmem>>, vector<1x128xf32>
    %8 = vector.broadcast %7 : vector<1x128xf32> to vector<8x128xf32>
    %9 = arith.addf %6, %8 : vector<8x128xf32>
    %cst_10 = arith.constant 0.000000e+00 : f32
    %10 = vector.broadcast %cst_10 : f32 to vector<8x128xf32>
    %11 = arith.maximumf %9, %10 : vector<8x128xf32>
    %c0_11 = arith.constant 0 : index
    %c0_12 = arith.constant 0 : index
    %12 = vector.load %arg6[%c0_11, %c0_12] : memref<8x128xf32, #tpu.memory_space<vmem>>, vector<8x128xf32>
    tpu.vector_store %arg6[%c0_11, %c0_12], %11 {strides = array<i32>} : memref<8x128xf32, #tpu.memory_space<vmem>>, vector<8x128xf32>,
    return
  }
  func.func @transform_0(%arg0: i32) -> (i32, i32) {
    %c0_i32 = arith.constant 0 : i32
    %c0_i32_0 = arith.constant 0 : i32
    return %arg0, %c0_i32 : i32, i32
  }
  func.func @transform_1(%arg0: i32) -> (i32, i32) {
    %c0_i32 = arith.constant 0 : i32
    %c0_i32_0 = arith.constant 0 : i32
    return %arg0, %c0_i32 : i32, i32
  }
  func.func @transform_2(%arg0: i32) -> (i32, i32) {
    %c0_i32 = arith.constant 0 : i32
    %c0_i32_0 = arith.constant 0 : i32
    %c0_i32_1 = arith.constant 0 : i32
    return %c0_i32, %c0_i32_0 : i32, i32
  }
  func.func @transform_3(%arg0: i32) -> (i32, i32) {
    %c0_i32 = arith.constant 0 : i32
    %c0_i32_0 = arith.constant 0 : i32
    %c0_i32_1 = arith.constant 0 : i32
    return %c0_i32, %c0_i32_0 : i32, i32
  }
  func.func @transform_4(%arg0: i32) -> (i32, i32) {
    %c0_i32 = arith.constant 0 : i32
    %c0_i32_0 = arith.constant 0 : i32
    %c0_i32_1 = arith.constant 0 : i32
    return %c0_i32, %c0_i32_0 : i32, i32
  }
  func.func @transform_5(%arg0: i32) -> (i32, i32) {
    %c0_i32 = arith.constant 0 : i32
    %c0_i32_0 = arith.constant 0 : i32
    return %arg0, %c0_i32 : i32, i32
  }
}

</mosaic_0001>

<bundles_post_ra>
// kernel: tpu_custom_call.1
= control target key start
LH: loop header
LB: loop body
LE: loop exit
PB: predicated region body
PF: predicated region fallthrough
CT: control target
= control target key end

     0   :  { %10 = vsyncpa [#allocation3], 0  ;;  %s473_s0 = inlined_call_operand.hbm [shape: f32[8,32], index: 0, kind: input, shape index: {}]   ;;  %s474_s1 = inlined_call_operand.hbm [shape: f32[8,32], index: 1, kind: input, shape index: {}]   ;;  %s475_s2 = inlined_call_operand.hbm [shape: f32[32,64], index: 2, kind: input, shape index: {}]   ;;  %s476_s3 = inlined_call_operand.hbm [shape: f32[32,64], index: 3, kind: input, shape index: {}]   ;;  %s477_s4 = inlined_call_operand.vmem [shape: f32[1,128], index: 4, kind: input, shape index: {}]   ;;  %s478_s5 = inlined_call_operand.hbm [shape: f32[8,128], index: 5, kind: output, shape index: {}]  }
   0x1   :  { %11 = vsyncpa [#allocation6], 0 }
   0x2   :  { %12 = vsyncpa [#allocation9], 0 }
   0x3   :  { %13 = vsyncpa [#allocation4], 0  ;;  %s415_s18 = smov [#allocation5]   ;;  %s416_s20 = smov [#allocation2]  }
   0x4   :  { %s30_s19 = sshll.u32 %s415_s18, 4  ;;  %s20_s21 = sshll.u32 %s416_s20, 4  ;;  %s31_s19 = int_to_ptr.vmem [resolvable:$true] %s30_s19  ;;  %s21_s21 = int_to_ptr.vmem [resolvable:$true] %s20_s21 }
   0x5   :  { %s315_s22 = scalar_lea.vmem %s31_s19, 128  ;;  %p320_p1 = scmp.lt.s32.totalorder %s31_s19, %s31_s19 }
   0x6   :  { %p316_p0 = scmp.ne.s32.totalorder %s31_s19, %s315_s22  ;;  %p321_p2 = scmp.lt.s32.totalorder %s315_s22, %s315_s22 }
   0x8   :  { %p322_p3 = por %p321_p2, %p320_p1 }
   0xa   :  { %p323_p4 = pnand %p322_p3, %p316_p0 }
   0xc   :  { %326 = shalt.err (!%p323_p4)
}
   0xd   :  { %33 = dma.hbm_to_vmem [thread:$0]  %s474_s1, 128, %s31_s19, [#allocation6]  }
   0xe   :  { %s335_s25 = scalar_lea.vmem %s21_s21, 128  ;;  %p340_p6 = scmp.lt.s32.totalorder %s21_s21, %s21_s21 }
   0xf   :  { %p336_p5 = scmp.ne.s32.totalorder %s21_s21, %s335_s25  ;;  %p341_p7 = scmp.lt.s32.totalorder %s335_s25, %s335_s25 }
  0x11   :  { %p342_p8 = por %p341_p7, %p340_p6 }
  0x13   :  { %p343_p9 = pnand %p342_p8, %p336_p5 }
  0x15   :  { %346 = shalt.err (!%p343_p9)
}
  0x16   :  { %23 = dma.hbm_to_vmem [thread:$0]  %s473_s0, 128, %s21_s21, [#allocation3]  }
  0x17   :  { %s417_s28 = smov [#allocation7]  }
  0x18   :  { %s39_s29 = sshll.u32 %s417_s28, 4  ;;  %s40_s29 = int_to_ptr.vmem [resolvable:$true] %s39_s29 }
  0x19   :  { %s355_s30 = scalar_lea.vmem %s40_s29, 512  ;;  %p360_p11 = scmp.lt.s32.totalorder %s40_s29, %s40_s29 }
  0x1a   :  { %p356_p10 = scmp.ne.s32.totalorder %s40_s29, %s355_s30  ;;  %p361_p12 = scmp.lt.s32.totalorder %s355_s30, %s355_s30 }
  0x1c   :  { %p362_p13 = por %p361_p12, %p360_p11 }
  0x1e   :  { %p363_p0 = pnand %p362_p13, %p356_p10 }
  0x20   :  { %366 = shalt.err (!%p363_p0)
}
  0x21   :  { %s418_s1 = smov 128   ;;  %s419_s6 = smov 8  }
  0x22   :  { %45 = dma.hbm_to_vmem [thread:$0]  %s475_s2, 512, %s40_s29, [#allocation6], %s418_s1, %s418_s1, %s419_s6  }
  0x23   :  { %s420_s9 = smov [#allocation8]  }
  0x24   :  { %s51_s10 = sshll.u32 %s420_s9, 4  ;;  %s52_s10 = int_to_ptr.vmem [resolvable:$true] %s51_s10 }
  0x25   :  { %s375_s0 = scalar_lea.vmem %s52_s10, 512  ;;  %p380_p2 = scmp.lt.s32.totalorder %s52_s10, %s52_s10 }
  0x26   :  { %p376_p1 = scmp.ne.s32.totalorder %s52_s10, %s375_s0  ;;  %p381_p3 = scmp.lt.s32.totalorder %s375_s0, %s375_s0 }
  0x28   :  { %p382_p4 = por %p381_p3, %p380_p2 }
  0x2a   :  { %p383_p5 = pnand %p382_p4, %p376_p1 }
  0x2c   :  { %386 = shalt.err (!%p383_p5)
}
  0x2d   :  { %57 = dma.hbm_to_vmem [thread:$0]  %s476_s3, 512, %s52_s10, [#allocation9], %s418_s1, %s418_s1, %s419_s6  }
  0x2e   :  { %407 = dma.done.wait [#allocation3], 128  }
  0x2f   :  { %408 = vsyncadd [#allocation3], 4294967168 }
  0x30   :  { %409 = dma.done.wait [#allocation6], 640  }
  0x31   :  { %410 = vsyncadd [#allocation6], 4294966656 }
  0x32   :  { %411 = dma.done.wait [#allocation9], 512  }
  0x33   :  { %412 = vsyncadd [#allocation9], 4294966784  ;;  %v421_v0 = vmov 0.0   ;;  %vm422_vm0 = vmmov 0   ;;  %v155_v1 = vld [vmem:[#allocation8 + $0x18] sm:$0xff]  ;;  %v154_v2 = vld [vmem:[#allocation8 + $0x10] sm:$0xff] }
  0x34   :  { %286 = vmatprep.subr.mxu1 %v421_v0  ;;  %294 = vmatprep.mubr.msk.f32.mxu1 %vm422_vm0, %v421_v0  ;;  %v76_v3 = vld [vmem:[#allocation7 + $0x18] sm:$0xff]  ;;  %v153_v4 = vld [vmem:[#allocation8 + $0x8] sm:$0xff]  ;;  %v75_v5 = vld [vmem:[#allocation7 + $0x10] sm:$0xff]  ;;  %vm77_vm1 = vcmask 261120   ;;  %s423_s2 = smov 64   ;;  %vm233_vm2 = vcmask 523264  }
  0x35   :  { %275 = vmatprep.subr.mxu0 %v421_v0  ;;  %283 = vmatprep.mubr.msk.f32.mxu0 %vm422_vm0, %v421_v0  ;;  %v74_v6 = vld [vmem:[#allocation7 + $0x8] sm:$0xff]  ;;  %v152_v7 = vld [vmem:[#allocation8] sm:$0xff]  ;;  %v151_v8 = vld [vmem:[#allocation5] sm:$0xff]  ;;  %s424_s14 = smov [#allocation10]  }
  0x36   :  { %287 = vmatpush3.msra.mxu1 %v155_v1  ;;  %276 = vmatpush3.msra.mxu0 %v76_v3  ;;  %v73_v9 = vld [vmem:[#allocation7] sm:$0xff]  ;;  %v72_v10 = vld [vmem:[#allocation2] sm:$0xff]  ;;  %s251_s15 = sshll.u32 %s424_s14, 4  ;;  %s252_s15 = int_to_ptr.vmem [resolvable:$true] %s251_s15 }
  0x37   :  { %288 = vmatprep.subr.mxu1 %v421_v0  ;;  %277 = vmatprep.subr.mxu0 %v421_v0  ;;  %v264_v15 = vld [vmem:[%s477_s4] ss:$0 sm:$0xff]  ;;  %s387_s16 = scalar_lea.vmem %s252_s15, 128  ;;  %p392_p7 = scmp.lt.s32.totalorder %s252_s15, %s252_s15 }
  0x38   :  { %289 = vmatpush3.msra.mxu1 %v154_v2  ;;  %278 = vmatpush3.msra.mxu0 %v75_v5  ;;  %p388_p6 = scmp.ne.s32.totalorder %s252_s15, %s387_s16  ;;  %p393_p8 = scmp.lt.s32.totalorder %s387_s16, %s387_s16 }
  0x39   :  { %290 = vmatprep.subr.mxu1 %v421_v0  ;;  %279 = vmatprep.subr.mxu0 %v421_v0 }
  0x3a   :  { %291 = vmatpush3.msra.mxu1 %v153_v4  ;;  %280 = vmatpush3.msra.mxu0 %v74_v6  ;;  %p394_p9 = por %p393_p8, %p392_p7 }
  0x3b   :  { %292 = vmatprep.subr.mxu1 %v421_v0  ;;  %281 = vmatprep.subr.mxu0 %v421_v0 }
  0x3c   :  { %293 = vmatpush3.msra.mxu1 %v152_v7  ;;  %282 = vmatpush3.msra.mxu0 %v73_v9  ;;  %p395_p10 = pnand %p394_p9, %p388_p6 }
  0x3d   :  { %295 = vmatmul.mubr.msk.f32.vlgmr.msra.gmra.mxu1 %vm77_vm1, %v151_v8  ;;  %284 = vmatmul.mubr.msk.f32.vlgmr.msra.gmra.mxu0 %vm77_vm1, %v72_v10 }
  0xfd   :  { %v225_v11 = vpop.f32.mrf.mxu1  ;;  %v147_v12 = vpop.f32.mrf.mxu0 }
  0xfe   :  { %230 = vrot.lane.b32.xlu0 %v225_v11, %s423_s2 }
  0xff   :  { %v296_v13 = vpop.f32.mrf.mxu1  ;;  %v285_v14 = vpop.f32.mrf.mxu0 }
 0x170   :  { %v231_v16 = vpop.permute.xlu0 %230 }
 0x171   :  { %v234_v17 = vsel %vm233_vm2, %v147_v12, %v231_v16 }
 0x172   :  { %v242_v18 = vadd.f32 %v264_v15, %v234_v17 }
 0x174   :  { %v243_v19 = vmax.f32 %v242_v18, 0.0 }
 0x176   :  { %244 = vst [vmem:[#allocation10] sm:$0xff] %v243_v19 }
 0x177   :  { %398 = shalt.err (!%p395_p10)
}
 0x178   :  { %254 = dma.vmem_to_hbm [thread:$0]  %s252_s15, 128, %s478_s5, [#allocation4]  }
 0x179   :  { %413 = dma.done.wait [#allocation4], 128  }
 0x17a   :  { %414 = vsyncadd [#allocation4], 4294967168 }
 0x17b   :  { %258 = vsyncpa [#allocation3], 1 }
 0x17c   :  { %259 = vsyncpa [#allocation6], 1 }
 0x17d   :  { %260 = vsyncpa [#allocation9], 1 }
 0x17e   :  { %261 = vsyncpa [#allocation4], 1 }

</bundles_post_ra>
